<compile_context>
chip_gen: v5e
topology: v5e:2x2
jax: 0.10.0
libtpu: 0.0.40
codegen_flags: <defaults>
</compile_context>

<pallas_src>
import jax
import jax.numpy as jnp
from jax.experimental import pallas as pl
from jax.experimental.pallas import tpu as pltpu


def _round_up(x: int, m: int) -> int:
    return ((x + m - 1) // m) * m


def _tile_budget_bytes() -> int:
    """Per-encoder-tile VMEM budget.

    Double-buffered (x2) this stays comfortably inside every generation's
    scoped-VMEM default (16 MiB on v5e, 32 MiB on v6e/v7x) with room left for
    the decoder row, output block, accumulator and compiler scratch.
    """
    try:
        cap = pltpu.get_tpu_info().vmem_capacity_bytes
    except Exception:  # not on a real TPU / interpret mode
        cap = 64 * 1024 * 1024
    return max(512 * 1024, min(4 * 1024 * 1024, cap // 16))


def _choose_tiles(B: int, S: int, H: int, itemsize: int):
    """Pick (tile_b, tile_s, tile_h) honoring the (8, 128) block rules."""
    budget = _tile_budget_bytes()

    # --- H (reduction) tile: prefer full H; fall back to a lane-aligned chunk
    # only when even `min_rows` rows of full H would blow the budget.
    min_rows = S if S <= 128 else 128
    if min_rows * H * itemsize <= budget:
        tile_h = H
    else:
        tile_h = max(128, (budget // (min_rows * itemsize * 128)) * 128)
        tile_h = min(tile_h, H)

    # --- S tile: full S when it fits (valid even if unaligned), otherwise the
    # largest multiple of 128 within the budget (keeps the output lane-dense).
    rows_fit = max(min_rows, budget // (tile_h * itemsize))
    if S <= rows_fit:
        tile_s = S
    else:
        tile_s = max(128, (rows_fit // 128) * 128)

    # v7x: guarantee >= 2 blocks on a parallel axis when B == 1 so both
    # TensorCores get work.
    if B == 1 and tile_s == S and S >= 256:
        tile_s = _round_up(pl.cdiv(S, 2), 128)

    # --- Batch tile: when one batch's whole (S, H) slab is small, fold several
    # batches per grid step so each step DMAs >= ~1 MiB.
    tile_b = 1
    if tile_h == H and tile_s == S:
        per_batch = S * H * itemsize
        want = max(1, -(-(1024 * 1024) // per_batch))            # ceil(1 MiB / slab)
        want = min(want, max(1, budget // per_batch))
        if want >= B:
            tile_b = B
        else:
            tile_b = min(B, _round_up(want, 8))  # out block sublane rule: %8 or ==B

    return tile_b, tile_s, tile_h


def _make_kernel(n_h: int, tile_h: int, h_total: int):
    ragged_h = (h_total % tile_h) != 0

    def kernel(enc_ref, dec_ref, out_ref, acc_ref):
        # enc_ref: (TB, TS, TH), dec_ref: (TB, 1, TH), out_ref/acc_ref: (TB, TS)
        # Cast only the tiny decoder row; the encoder tile stays in its native
        # dtype and the upcast fuses into the broadcast-multiply (f32 result).
        dec = dec_ref[...].astype(jnp.float32)
        prod = enc_ref[...] * dec                        # VPU broadcast-multiply
        if ragged_h:
            # Mask the padded tail of the last H block so OOB reads never
            # contaminate the reduction.
            h = pl.program_id(2)
            lane = jax.lax.broadcasted_iota(jnp.int32, prod.shape, prod.ndim - 1)
            prod = jnp.where(lane < (h_total - h * tile_h), prod, 0.0)
        # Cross-lane (XLU) reduce over H with f32 accumulation.
        partial = jnp.sum(prod, axis=-1, dtype=jnp.float32)     # (TB, TS)
        if n_h == 1:
            out_ref[...] = partial.astype(out_ref.dtype)
        else:
            h = pl.program_id(2)

            @pl.when(h == 0)
            def _():
                acc_ref[...] = jnp.zeros_like(acc_ref)

            acc_ref[...] += partial

            @pl.when(h == n_h - 1)
            def _():
                out_ref[...] = acc_ref[...].astype(out_ref.dtype)

    return kernel


def similarity(encoder_states: jax.Array, decoder_state: jax.Array) -> jax.Array:
    """encoder_states: (B, S, H), decoder_state: (B, H, 1) -> (B, S, 1)."""
    B, S, H = encoder_states.shape
    assert decoder_state.shape == (B, H, 1)
    out_dtype = jnp.result_type(encoder_states.dtype, decoder_state.dtype)

    # (B, H, 1) -> (B, 1, H): same linear layout, free reshape in the wrapper.
    dec_row = decoder_state.reshape(B, 1, H)

    itemsize = encoder_states.dtype.itemsize
    tile_b, tile_s, tile_h = _choose_tiles(B, S, H, itemsize)
    n_b = pl.cdiv(B, tile_b)
    n_s = pl.cdiv(S, tile_s)
    n_h = pl.cdiv(H, tile_h)

    kernel = _make_kernel(n_h, tile_h, H)

    out2d = pl.pallas_call(
        kernel,
        out_shape=jax.ShapeDtypeStruct((B, S), out_dtype),
        grid_spec=pltpu.PrefetchScalarGridSpec(
            num_scalar_prefetch=0,
            grid=(n_b, n_s, n_h),
            in_specs=[
                # streamed encoder tile
                pl.BlockSpec((tile_b, tile_s, tile_h), lambda b, s, h: (b, s, h)),
                # decoder row: same block for every S tile of a batch (resident)
                pl.BlockSpec((tile_b, 1, tile_h), lambda b, s, h: (b, 0, h)),
            ],
            # lane-dense, sublane-dense output block
            out_specs=pl.BlockSpec((tile_b, tile_s), lambda b, s, h: (b, s)),
            scratch_shapes=[pltpu.VMEM((tile_b, tile_s), jnp.float32)],
        ),
        compiler_params=pltpu.CompilerParams(
            # batch / S tiles independent -> megacore sharding on v7x;
            # H is a reduction axis -> "arbitrary".
            dimension_semantics=("parallel", "parallel", "arbitrary"),
        ),
        cost_estimate=pl.CostEstimate(
            flops=2 * B * S * H,
            transcendentals=0,
            bytes_accessed=(B * S * H + B * H) * itemsize
            + B * S * jnp.dtype(out_dtype).itemsize,
        ),
    )(encoder_states, dec_row)

    # (B, S) -> (B, S, 1): preserve torch.matmul output shape (free reshape).
    return out2d.reshape(B, S, 1)


if __name__ == "__main__":
    key = jax.random.PRNGKey(0)
    k_enc, k_dec, k_enc2, k_dec2, k_enc3, k_dec3 = jax.random.split(key, 6)

    # Small shapes consistent with the attention-similarity step.
    B, S, H = 2, 8, 32
    encoder_states = jax.random.normal(k_enc, (B, S, H), dtype=jnp.float32)
    decoder_state = jax.random.normal(k_dec, (B, H, 1), dtype=jnp.float32)

    out = jax.block_until_ready(similarity(encoder_states, decoder_state))
    ref = jnp.matmul(encoder_states, decoder_state)
    assert out.shape == (B, S, 1)
    assert jnp.allclose(out, ref, atol=1e-5, rtol=1e-5)

    # Lane-aligned shape to exercise the aligned / batch-folded path.
    B2, S2, H2 = 2, 256, 128
    enc2 = jax.random.normal(k_enc2, (B2, S2, H2), dtype=jnp.float32)
    dec2 = jax.random.normal(k_dec2, (B2, H2, 1), dtype=jnp.float32)
    out2 = jax.block_until_ready(similarity(enc2, dec2))
    ref2 = jnp.matmul(enc2, dec2)
    assert out2.shape == (B2, S2, 1)
    assert jnp.allclose(out2, ref2, atol=1e-4, rtol=1e-4)

    # Unaligned small shape (exercises full-dim blocks + batch grouping).
    B3, S3, H3 = 3, 40, 96
    enc3 = jax.random.normal(k_enc3, (B3, S3, H3), dtype=jnp.float32)
    dec3 = jax.random.normal(k_dec3, (B3, H3, 1), dtype=jnp.float32)
    out3 = jax.block_until_ready(similarity(enc3, dec3))
    ref3 = jnp.matmul(enc3, dec3)
    assert out3.shape == (B3, S3, 1)
    assert jnp.allclose(out3, ref3, atol=1e-4, rtol=1e-4)

    print("KERNEL_OK")
</pallas_src>

<mosaic_0001>
module attributes {stable_mosaic.version = 11 : i64} {
  func.func @kernel(%arg0: i32, %arg1: i32, %arg2: i32, %arg3: memref<2x8x32xf32, #tpu.memory_space<vmem>>, %arg4: memref<2x1x32xf32, #tpu.memory_space<vmem>>, %arg5: memref<2x8xf32, #tpu.memory_space<vmem>>, %arg6: memref<2x8xf32, #tpu.memory_space<vmem>>) attributes {dimension_semantics = [#tpu.dimension_semantics<parallel>, #tpu.dimension_semantics<parallel>, #tpu.dimension_semantics<arbitrary>], iteration_bounds = array<i64: 1, 1, 1>, scalar_prefetch = 0 : i64, scratch_operands = 1 : i64, tpu.core_type = #tpu.core_type<tc>, window_params = [{transform_indices = @transform_0, window_bounds = array<i64: 2, 8, 32>}, {transform_indices = @transform_1, window_bounds = array<i64: 2, 1, 32>}, {transform_indices = @transform_2, window_bounds = array<i64: 2, 8>}]} {
    %c0 = arith.constant 0 : index
    %c0_0 = arith.constant 0 : index
    %c0_1 = arith.constant 0 : index
    %0 = vector.load %arg4[%c0, %c0_0, %c0_1] : memref<2x1x32xf32, #tpu.memory_space<vmem>>, vector<2x1x32xf32>
    %c0_2 = arith.constant 0 : index
    %c0_3 = arith.constant 0 : index
    %c0_4 = arith.constant 0 : index
    %1 = vector.load %arg3[%c0_2, %c0_3, %c0_4] : memref<2x8x32xf32, #tpu.memory_space<vmem>>, vector<2x8x32xf32>
    %2 = vector.broadcast %0 : vector<2x1x32xf32> to vector<2x8x32xf32>
    %3 = arith.mulf %1, %2 : vector<2x8x32xf32>
    %cst = arith.constant dense<0.000000e+00> : vector<2x8xf32>
    %4 = vector.multi_reduction <add>, %3, %cst [2] : vector<2x8x32xf32> to vector<2x8xf32>
    %c0_5 = arith.constant 0 : index
    %c0_6 = arith.constant 0 : index
    %5 = vector.load %arg5[%c0_5, %c0_6] : memref<2x8xf32, #tpu.memory_space<vmem>>, vector<2x8xf32>
    tpu.vector_store %arg5[%c0_5, %c0_6], %4 {strides = array<i32>} : memref<2x8xf32, #tpu.memory_space<vmem>>, vector<2x8xf32>,
    return
  }
  func.func @transform_0(%arg0: i32, %arg1: i32, %arg2: i32) -> (i32, i32, i32) {
    %c0_i32 = arith.constant 0 : i32
    return %arg0, %arg1, %arg2 : i32, i32, i32
  }
  func.func @transform_1(%arg0: i32, %arg1: i32, %arg2: i32) -> (i32, i32, i32) {
    %c0_i32 = arith.constant 0 : i32
    %c0_i32_0 = arith.constant 0 : i32
    return %arg0, %c0_i32, %arg2 : i32, i32, i32
  }
  func.func @transform_2(%arg0: i32, %arg1: i32, %arg2: i32) -> (i32, i32) {
    %c0_i32 = arith.constant 0 : i32
    return %arg0, %arg1 : i32, i32
  }
}

</mosaic_0001>

<bundles_post_ra>
// kernel: tpu_custom_call.1
= control target key start
LH: loop header
LB: loop body
LE: loop exit
PB: predicated region body
PF: predicated region fallthrough
CT: control target
= control target key end

     0   :  { %7 = vsyncpa [#allocation4], 0  ;;  %s210_s0 = inlined_call_operand.hbm [shape: f32[2,8,32], index: 0, kind: input, shape index: {}]   ;;  %s211_s1 = inlined_call_operand.hbm [shape: f32[2,1,32], index: 1, kind: input, shape index: {}]   ;;  %s212_s2 = inlined_call_operand.hbm [shape: f32[2,8], index: 2, kind: output, shape index: {}]  }
   0x1   :  { %8 = vsyncpa [#allocation7], 0 }
   0x2   :  { %9 = vsyncpa [#allocation5], 0  ;;  %s14_s11 = sshll.u32 %s210_s0, 4  ;;  %s179_s12 = smov [#allocation3]   ;;  %s15_s11 = int_to_ptr.hbm [resolvable:$true] %s14_s11 }
   0x3   :  { %s16_s13 = sshll.u32 %s179_s12, 4  ;;  %s27_s16 = sshll.u32 %s211_s1, 4  ;;  %s17_s13 = int_to_ptr.vmem [resolvable:$true] %s16_s13  ;;  %s28_s16 = int_to_ptr.hbm [resolvable:$true] %s27_s16 }
   0x4   :  { %s180_s17 = smov 128   ;;  %s181_s18 = smov 8  }
   0x5   :  { %22 = dma.hbm_to_vmem [thread:$0]  %s15_s11, 256, %s17_s13, [#allocation4], %s180_s17, %s180_s17, %s181_s18  }
   0x6   :  { %s182_s19 = smov [#allocation6]   ;;  %s183_s21 = smov 16  }
   0x7   :  { %s29_s20 = sshll.u32 %s182_s19, 4  ;;  %s184_s22 = smov 1   ;;  %s30_s20 = int_to_ptr.vmem [resolvable:$true] %s29_s20 }
   0x8   :  { %35 = dma.hbm_to_vmem [thread:$0]  %s28_s16, 32, %s30_s20, [#allocation7], %s183_s21, %s183_s21, %s184_s22  }
   0x9   :  { %173 = dma.done.wait [#allocation4], 256  }
   0xa   :  { %174 = vsyncadd [#allocation4], 4294967040 }
   0xb   :  { %175 = dma.done.wait [#allocation7], 32  }
   0xc   :  { %176 = vsyncadd [#allocation7], 4294967264  ;;  %v46_v0 = vld [vmem:[#allocation3] sm:$0xff]  ;;  %v99_v1 = vld [vmem:[#allocation6] ss:$0 sm:$0xff]  ;;  %vm56_vm0 = vcmask 261120   ;;  %v65_v9 = vlaneseq }
   0xd   :  { %v54_v2 = vmul.f32 %v99_v1, %v46_v0  ;;  %v100_v3 = vld [vmem:[#allocation6 + $0x1] ss:$0 sm:$0xff]  ;;  %v47_v4 = vld [vmem:[#allocation3 + $0x8] sm:$0xff]  ;;  %s185_s0 = smov [#allocation8]   ;;  %s81_s25 = sshll.u32 %s212_s2, 4  ;;  %vm69_vm1 = vcmask 1041409   ;;  %s82_s25 = int_to_ptr.hbm [resolvable:$true] %s81_s25 }
   0xe   :  { %v55_v6 = vmul.f32 %v100_v3, %v47_v4  ;;  %v66_v10 = vand.u32 127, %v65_v9  ;;  %s79_s1 = sshll.u32 %s185_s0, 4  ;;  %vm72_vm2 = vcmask 58368   ;;  %s80_s1 = int_to_ptr.vmem [resolvable:$true] %s79_s1 }
   0xf   :  { %v57_v5 = vsel %vm56_vm0, %v54_v2, 0.0 }
  0x10   :  { %58 = vadd.xlane.f32.xlu0 %v57_v5  ;;  %v60_v7 = vsel %vm56_vm0, %v55_v6, 0.0 }
  0x18   :  { %61 = vadd.xlane.f32.xlu0 %v60_v7 }
  0x83   :  { %v59_v8 = vpop.xlane.xlu0 %58 }
  0x84   :  { %v67_v12 = vperm.slane %v59_v8, %v66_v10 }
  0x8b   :  { %v62_v11 = vpop.xlane.xlu0 %61 }
  0x8c   :  { %v68_v13 = vperm.slane %v62_v11, %v66_v10 }
  0x8e   :  { %v70_v14 = vsel %vm69_vm1, %v68_v13, %v67_v12 }
  0x8f   :  { %73 = vst.msk [vmem:[#allocation8] sm:$0x3] %vm72_vm2, %v70_v14 }
  0x90   :  { %84 = dma.vmem_to_hbm [thread:$0]  %s80_s1, 32, %s82_s25, [#allocation5]  }
  0x91   :  { %177 = dma.done.wait [#allocation5], 32  }
  0x92   :  { %178 = vsyncadd [#allocation5], 4294967264 }
  0x93   :  { %89 = vsyncpa [#allocation4], 1 }
  0x94   :  { %90 = vsyncpa [#allocation7], 1 }
  0x95   :  { %91 = vsyncpa [#allocation5], 1 }

</bundles_post_ra>
